<compile_context>
chip_gen: v5e
topology: v5e:2x2
jax: 0.10.0
libtpu: 0.0.40
codegen_flags: <defaults>
</compile_context>

<pallas_src>
import functools

import jax
import jax.numpy as jnp
import numpy as np
from jax import lax
from jax.experimental import pallas as pl
from jax.experimental.pallas import tpu as pltpu


def _cam_neighbor_kernel(cam_xyz_ref, neighbors_ref, *,
                         Nx, Ny, Ax, Ay, x_lo, y_lo, sep_x, sep_y, eps):
    # ---- all scalar (SMEM / sreg) work ----
    cx = cam_xyz_ref[0]
    cy = cam_xyz_ref[1]

    # grid coordinates of the camera: (xy - range_lo) / sep  (sep baked static, f32)
    cam_x = (cx - x_lo) / sep_x
    cam_y = (cy - y_lo) / sep_y

    # nearest camera index == F.grid_sample(cams, ..., mode='nearest',
    # align_corners=True): the normalization/unnormalization cancels, leaving
    # rounding of cam_xy. floor(x + 0.5) so negative out-of-range coords round like
    # the reference; clamping replaces grid_sample's padding_mode='zeros' for
    # cameras outside cam_range (identical whenever the camera lies inside range).
    nbx = jnp.clip(jnp.floor(cam_x + 0.5).astype(jnp.int32), 0, Nx - 1)
    nby = jnp.clip(jnp.floor(cam_y + 0.5).astype(jnp.int32), 0, Ny - 1)

    # sign(dct) == -1  <=>  dct < -eps  (|dct| <= eps forced to +1 before sign()).
    neg_x = (cam_x - nbx.astype(jnp.float32)) < -eps
    neg_y = (cam_y - nby.astype(jnp.float32)) < -eps

    half_x = (Ax - 1) // 2
    if Ax % 2 == 0:
        x0 = nbx - jnp.where(neg_x, half_x + 1, half_x).astype(jnp.int32)
    else:
        x0 = nbx - half_x
    half_y = (Ay - 1) // 2
    if Ay % 2 == 0:
        y0 = nby - jnp.where(neg_y, half_y + 1, half_y).astype(jnp.int32)
    else:
        y0 = nby - half_y

    x0 = jnp.maximum(x0, 0)
    y0 = jnp.maximum(y0, 0)
    x0 = (x0 - jnp.maximum(x0 + Ax - Nx, 0)).astype(jnp.int32)
    y0 = (y0 - jnp.maximum(y0 + Ay - Ny, 0)).astype(jnp.int32)

    # neighbors_flat[2*(a*Ay + b) + {0,1}] = (x0 + a, y0 + b)
    if Ax * Ay <= 64:
        # Small aperture: statically unrolled scalar SMEM stores (Ax*Ay*2 sst),
        # written directly into the flat final layout.
        for a in range(Ax):
            row_x = x0 + a
            for b in range(Ay):
                idx = a * Ay + b
                neighbors_ref[2 * idx] = row_x
                neighbors_ref[2 * idx + 1] = y0 + b
    else:
        # Large aperture: keep instruction stream / compile time bounded.
        def body(i, carry):
            a = i // Ay
            b = i - a * Ay
            neighbors_ref[2 * i] = x0 + a
            neighbors_ref[2 * i + 1] = y0 + b
            return carry
        lax.fori_loop(0, Ax * Ay, body, 0)


def cam_neighbor(cam_xyz, cam_range, cam_num, aperture_size, eps=1e-6):
    """Pallas equivalent of CamNeighbor.forward.

    Args:
      cam_xyz: (3,) float32 camera position (runtime input).
      cam_range: (2, 2) array-like [[x_min, x_max], [y_min, y_max]] -- module
        construction constant, baked into the kernel as static f32 scalars.
      cam_num: static (Nx, Ny) ints.
      aperture_size: static (Ax, Ay) ints.
    Returns:
      cam_xy: (2,) float32, neighbors: (Ax*Ay, 2) int32.
    """
    Nx, Ny = int(cam_num[0]), int(cam_num[1])
    Ax, Ay = int(aperture_size[0]), int(aperture_size[1])
    assert Nx > 1 and Ny > 1, "cam_num entries must be > 1 (sep divides by N-1)"

    # Static per-module constants, computed in f32 to match the torch reference.
    cr = np.asarray(cam_range, np.float32)
    x_lo = np.float32(cr[0, 0]); x_hi = np.float32(cr[0, 1])
    y_lo = np.float32(cr[1, 0]); y_hi = np.float32(cr[1, 1])
    sep_x = np.float32((x_hi - x_lo) / np.float32(Nx - 1))
    sep_y = np.float32((y_hi - y_lo) / np.float32(Ny - 1))

    cam_xyz = jnp.asarray(cam_xyz, jnp.float32)

    kernel = functools.partial(
        _cam_neighbor_kernel,
        Nx=Nx, Ny=Ny, Ax=Ax, Ay=Ay,
        x_lo=float(x_lo), y_lo=float(y_lo),
        sep_x=float(sep_x), sep_y=float(sep_y),
        eps=float(eps))

    neighbors_flat = pl.pallas_call(
        kernel,
        out_shape=jax.ShapeDtypeStruct((Ax * Ay * 2,), jnp.int32),
        in_specs=[pl.BlockSpec(memory_space=pltpu.MemorySpace.SMEM)],
        out_specs=pl.BlockSpec(memory_space=pltpu.MemorySpace.SMEM),
        cost_estimate=pl.CostEstimate(flops=32, transcendentals=0,
                                      bytes_accessed=12 + Ax * Ay * 2 * 4),
    )(cam_xyz)

    # cam_xy recomputed from static constants with 3 trivial (fused) XLA ops --
    # cheaper than a second SMEM->HBM writeback DMA from the kernel.
    lo = jnp.array([x_lo, y_lo], jnp.float32)
    sep = jnp.array([sep_x, sep_y], jnp.float32)
    cam_xy = (cam_xyz[:2] - lo) / sep

    neighbors = neighbors_flat.reshape(Ax * Ay, 2)  # 48-byte reshape; noise.
    return cam_xy, neighbors


def _ref_cam_neighbor(cam_xyz, cam_range, cam_num, aperture_size, eps=1e-6):
    """Pure-numpy reference mirroring the PyTorch module semantics."""
    cam_xyz = np.asarray(cam_xyz, np.float32)
    cam_range = np.asarray(cam_range, np.float32)
    Nx, Ny = int(cam_num[0]), int(cam_num[1])
    Ax, Ay = int(aperture_size[0]), int(aperture_size[1])
    sep = (cam_range[:, 1] - cam_range[:, 0]) / (np.array([Nx, Ny], np.float32) - 1.0)
    cam_xy = (cam_xyz[:2] - cam_range[:, 0]) / sep
    nb = np.clip(np.floor(cam_xy + 0.5).astype(np.int32),
                 0, np.array([Nx, Ny], np.int32) - 1)
    dct = cam_xy - nb
    dct = np.where(np.abs(dct) <= eps, 1.0, dct)
    dct = np.sign(dct)
    starts = []
    for d, (ap, n) in enumerate(((Ax, Nx), (Ay, Ny))):
        half = (ap - 1) // 2
        if ap % 2 == 0 and dct[d] == -1:
            s = int(nb[d]) - (half + 1)
        else:
            s = int(nb[d]) - half
        s = max(0, s)
        s -= max(0, s + ap - n)
        starts.append(s)
    x0, y0 = starts
    neigh = np.stack(np.meshgrid(np.arange(x0, x0 + Ax),
                                 np.arange(y0, y0 + Ay), indexing="ij"), axis=-1)
    return cam_xy.astype(np.float32), neigh.reshape(Ax * Ay, 2).astype(np.int32)


if __name__ == "__main__":
    # Deterministic module "parameters" (from __init__ args).
    aperture_size = (2, 3)                                   # even x / odd y apertures
    cam_num = (4, 5)                                         # Nx x Ny camera grid
    cam_range = np.array([[-1.0, 1.0], [-0.5, 1.5]], np.float32)

    # Deterministic example input: camera position inside cam_range.
    key = jax.random.PRNGKey(0)
    u = jax.random.uniform(key, (3,), dtype=jnp.float32)
    lo = jnp.array([cam_range[0, 0], cam_range[1, 0], 0.0], jnp.float32)
    hi = jnp.array([cam_range[0, 1], cam_range[1, 1], 1.0], jnp.float32)
    cam_xyz = lo + u * (hi - lo)

    cam_xy, neighbors = cam_neighbor(cam_xyz, cam_range, cam_num, aperture_size)
    (cam_xy, neighbors) = jax.block_until_ready((cam_xy, neighbors))

    ref_xy, ref_nb = _ref_cam_neighbor(np.asarray(cam_xyz), cam_range, cam_num, aperture_size)
    assert cam_xy.shape == (2,) and cam_xy.dtype == jnp.float32
    assert neighbors.shape == (aperture_size[0] * aperture_size[1], 2)
    assert neighbors.dtype == jnp.int32
    assert np.allclose(np.asarray(cam_xy), ref_xy, atol=1e-5), (cam_xy, ref_xy)
    assert np.array_equal(np.asarray(neighbors), ref_nb), (neighbors, ref_nb)
    print("KERNEL_OK")
</pallas_src>

<mosaic_0001>
module attributes {stable_mosaic.version = 11 : i64} {
  func.func @_cam_neighbor_kernel(%arg0: memref<3xf32, #tpu.memory_space<smem>>, %arg1: memref<12xi32, #tpu.memory_space<smem>>) attributes {dimension_semantics = [], scalar_prefetch = 0 : i64, scratch_operands = 0 : i64, tpu.core_type = #tpu.core_type<tc>} {
    %c0 = arith.constant 0 : index
    %0 = memref.load %arg0[%c0] : memref<3xf32, #tpu.memory_space<smem>>
    %c1 = arith.constant 1 : index
    %1 = memref.load %arg0[%c1] : memref<3xf32, #tpu.memory_space<smem>>
    %cst = arith.constant -1.000000e+00 : f32
    %2 = arith.subf %0, %cst : f32
    %cst_0 = arith.constant 0.666666686 : f32
    %3 = arith.divf %2, %cst_0 : f32
    %cst_1 = arith.constant -5.000000e-01 : f32
    %4 = arith.subf %1, %cst_1 : f32
    %cst_2 = arith.constant 5.000000e-01 : f32
    %5 = arith.divf %4, %cst_2 : f32
    %cst_3 = arith.constant 5.000000e-01 : f32
    %6 = arith.addf %3, %cst_3 : f32
    %7 = math.floor %6 : f32
    %8 = arith.fptosi %7 : f32 to i32
    %c0_i32 = arith.constant 0 : i32
    %c3_i32 = arith.constant 3 : i32
    %9 = arith.maxsi %c0_i32, %8 : i32
    %10 = arith.minsi %c3_i32, %9 : i32
    %cst_4 = arith.constant 5.000000e-01 : f32
    %11 = arith.addf %5, %cst_4 : f32
    %12 = math.floor %11 : f32
    %13 = arith.fptosi %12 : f32 to i32
    %c0_i32_5 = arith.constant 0 : i32
    %c4_i32 = arith.constant 4 : i32
    %14 = arith.maxsi %c0_i32_5, %13 : i32
    %15 = arith.minsi %c4_i32, %14 : i32
    %16 = arith.sitofp %10 : i32 to f32
    %17 = arith.subf %3, %16 : f32
    %cst_6 = arith.constant -9.99999997E-7 : f32
    %18 = arith.cmpf olt, %17, %cst_6 : f32
    %c1_i32 = arith.constant 1 : i32
    %c0_i32_7 = arith.constant 0 : i32
    %19 = arith.select %18, %c1_i32, %c0_i32_7 : i32
    %20 = arith.subi %10, %19 : i32
    %c1_i32_8 = arith.constant 1 : i32
    %21 = arith.subi %15, %c1_i32_8 : i32
    %c0_i32_9 = arith.constant 0 : i32
    %22 = arith.maxsi %20, %c0_i32_9 : i32
    %c0_i32_10 = arith.constant 0 : i32
    %23 = arith.maxsi %21, %c0_i32_10 : i32
    %c2_i32 = arith.constant 2 : i32
    %24 = arith.addi %22, %c2_i32 : i32
    %c4_i32_11 = arith.constant 4 : i32
    %25 = arith.subi %24, %c4_i32_11 : i32
    %c0_i32_12 = arith.constant 0 : i32
    %26 = arith.maxsi %25, %c0_i32_12 : i32
    %27 = arith.subi %22, %26 : i32
    %c3_i32_13 = arith.constant 3 : i32
    %28 = arith.addi %23, %c3_i32_13 : i32
    %c5_i32 = arith.constant 5 : i32
    %29 = arith.subi %28, %c5_i32 : i32
    %c0_i32_14 = arith.constant 0 : i32
    %30 = arith.maxsi %29, %c0_i32_14 : i32
    %31 = arith.subi %23, %30 : i32
    %c0_i32_15 = arith.constant 0 : i32
    %32 = arith.addi %27, %c0_i32_15 : i32
    %c0_16 = arith.constant 0 : index
    %33 = memref.load %arg1[%c0_16] : memref<12xi32, #tpu.memory_space<smem>>
    memref.store %32, %arg1[%c0_16] : memref<12xi32, #tpu.memory_space<smem>>
    %c0_i32_17 = arith.constant 0 : i32
    %34 = arith.addi %31, %c0_i32_17 : i32
    %c1_18 = arith.constant 1 : index
    %35 = memref.load %arg1[%c1_18] : memref<12xi32, #tpu.memory_space<smem>>
    memref.store %34, %arg1[%c1_18] : memref<12xi32, #tpu.memory_space<smem>>
    %c2 = arith.constant 2 : index
    %36 = memref.load %arg1[%c2] : memref<12xi32, #tpu.memory_space<smem>>
    memref.store %32, %arg1[%c2] : memref<12xi32, #tpu.memory_space<smem>>
    %c1_i32_19 = arith.constant 1 : i32
    %37 = arith.addi %31, %c1_i32_19 : i32
    %c3 = arith.constant 3 : index
    %38 = memref.load %arg1[%c3] : memref<12xi32, #tpu.memory_space<smem>>
    memref.store %37, %arg1[%c3] : memref<12xi32, #tpu.memory_space<smem>>
    %c4 = arith.constant 4 : index
    %39 = memref.load %arg1[%c4] : memref<12xi32, #tpu.memory_space<smem>>
    memref.store %32, %arg1[%c4] : memref<12xi32, #tpu.memory_space<smem>>
    %c2_i32_20 = arith.constant 2 : i32
    %40 = arith.addi %31, %c2_i32_20 : i32
    %c5 = arith.constant 5 : index
    %41 = memref.load %arg1[%c5] : memref<12xi32, #tpu.memory_space<smem>>
    memref.store %40, %arg1[%c5] : memref<12xi32, #tpu.memory_space<smem>>
    %c1_i32_21 = arith.constant 1 : i32
    %42 = arith.addi %27, %c1_i32_21 : i32
    %c6 = arith.constant 6 : index
    %43 = memref.load %arg1[%c6] : memref<12xi32, #tpu.memory_space<smem>>
    memref.store %42, %arg1[%c6] : memref<12xi32, #tpu.memory_space<smem>>
    %c0_i32_22 = arith.constant 0 : i32
    %44 = arith.addi %31, %c0_i32_22 : i32
    %c7 = arith.constant 7 : index
    %45 = memref.load %arg1[%c7] : memref<12xi32, #tpu.memory_space<smem>>
    memref.store %44, %arg1[%c7] : memref<12xi32, #tpu.memory_space<smem>>
    %c8 = arith.constant 8 : index
    %46 = memref.load %arg1[%c8] : memref<12xi32, #tpu.memory_space<smem>>
    memref.store %42, %arg1[%c8] : memref<12xi32, #tpu.memory_space<smem>>
    %c1_i32_23 = arith.constant 1 : i32
    %47 = arith.addi %31, %c1_i32_23 : i32
    %c9 = arith.constant 9 : index
    %48 = memref.load %arg1[%c9] : memref<12xi32, #tpu.memory_space<smem>>
    memref.store %47, %arg1[%c9] : memref<12xi32, #tpu.memory_space<smem>>
    %c10 = arith.constant 10 : index
    %49 = memref.load %arg1[%c10] : memref<12xi32, #tpu.memory_space<smem>>
    memref.store %42, %arg1[%c10] : memref<12xi32, #tpu.memory_space<smem>>
    %c2_i32_24 = arith.constant 2 : i32
    %50 = arith.addi %31, %c2_i32_24 : i32
    %c11 = arith.constant 11 : index
    %51 = memref.load %arg1[%c11] : memref<12xi32, #tpu.memory_space<smem>>
    memref.store %50, %arg1[%c11] : memref<12xi32, #tpu.memory_space<smem>>
    return
  }
}

</mosaic_0001>

<bundles_post_ra>
// kernel: tpu_custom_call.1
= control target key start
LH: loop header
LB: loop body
LE: loop exit
PB: predicated region body
PF: predicated region fallthrough
CT: control target
= control target key end

     0   :  { %6 = vsyncpa [#allocation3], 0  ;;  %s201_s0 = inlined_call_operand.hbm [shape: f32[3], index: 0, kind: input, shape index: {}]   ;;  %s202_s1 = inlined_call_operand.hbm [shape: s32[12], index: 1, kind: output, shape index: {}]  }
   0x1   :  { %7 = vsyncpa [#allocation4], 0  ;;  %s13_s8 = sshll.u32 %s201_s0, 4  ;;  %s181_s9 = smov [#allocation2]   ;;  %s14_s8 = int_to_ptr.hbm [resolvable:$true] %s13_s8 }
   0x2   :  { %16 = dma.hbm_to_smem %s14_s8, 16, %s181_s9, [#allocation3]  }
   0x3   :  { %177 = dma.done.wait [#allocation3], 16  }
   0x4   :  { %178 = vsyncadd [#allocation3], 4294967280 }
   0x5   :  { %21 = sfence }
   0x6   :  { %v182_v0 = vmov 0.6666667   ;;  %v183_v1 = vmov 0.5   ;;  %s22_s0 = sld [smem:[#allocation2]]  ;;  %s108_s8 = sshll.u32 %s202_s1, 4  ;;  %s109_s8 = int_to_ptr.hbm [resolvable:$true] %s108_s8 }
   0x7   :  { %149 = vrcp.f32 %v182_v0  ;;  %s119_s10 = sld [smem:[#allocation2 + $0x1]]  ;;  %s184_s9 = smov [#allocation5]  }
   0x8   :  { %151 = vrcp.f32 %v183_v1 }
   0xc   :  { %s120_s11 = sadd.f32 1.0, %s22_s0 }
   0xd   :  { %v150_v2 = vpop.eup %149  ;;  %s121_s12 = sadd.f32 0.5, %s119_s10 }
   0xe   :  { %v152_v3 = vpop.eup %151  ;;  %v26_v4 = vmul.f32 0.6666667, %v150_v2  ;;  %vm30_vm0 = vweird.f32 %v150_v2 }
   0xf   :  { %v36_v5 = vmul.f32 0.5, %v152_v3  ;;  %vm40_vm1 = vweird.f32 %v152_v3 }
  0x10   :  { %v27_v6 = vsub.f32 1.0, %v26_v4 }
  0x11   :  { %v37_v7 = vsub.f32 1.0, %v36_v5 }
  0x12   :  { %v28_v8 = vmul.f32 %v150_v2, %v27_v6 }
  0x13   :  { %v38_v9 = vmul.f32 %v152_v3, %v37_v7 }
  0x14   :  { %v29_v10 = vadd.f32 %v150_v2, %v28_v8 }
  0x15   :  { %v39_v11 = vadd.f32 %v152_v3, %v38_v9 }
  0x16   :  { %v31_v12 = vsel %vm30_vm0, %v150_v2, %v29_v10 }
  0x17   :  { %137 = vpush %v31_v12  ;;  %v41_v13 = vsel %vm40_vm1, %v152_v3, %v39_v11 }
  0x18   :  { %139 = vpush %v41_v13 }
  0x48   :  { %s138_s13 = spop %137 }
  0x49   :  { %s33_s14 = smul.f32 %s138_s13, %s120_s11  ;;  %s140_s15 = spop %139 }
  0x4a   :  { %s43_s16 = smul.f32 %s140_s15, %s121_s12 }
  0x4b   :  { %s44_s17 = sadd.f32 0.5, %s33_s14 }
  0x4c   :  { %s51_s18 = sadd.f32 0.5, %s43_s16 }
  0x4d   :  { %s45_s19 = sfloor.f32 %s44_s17 }
  0x4e   :  { %s142_s20 = scvt.f32.s32 %s45_s19  ;;  %s52_s21 = sfloor.f32 %s51_s18 }
  0x4f   :  { %s144_s22 = scvt.f32.s32 %s52_s21 }
  0x50   :  { %p47_p0 = scmp.gt.s32.totalorder %s142_s20, 0  ;;  %p122_p1 = scmp.lt.s32.totalorder %s142_s20, 3 }
  0x51   :  { %p54_p2 = scmp.gt.s32.totalorder %s144_s22, 0  ;;  %p127_p3 = scmp.lt.s32.totalorder %s144_s22, 4 }
  0x52   :  { %s204_s20 = smov (!%p47_p0, %s142_s20), 0 }
  0x53   :  { %s206_s22 = smov (!%p54_p2, %s144_s22), 0  ;;  %s208_s20 = smov (!%p122_p1, %s204_s20), 3 }
  0x54   :  { %s210_s22 = smov (!%p127_p3, %s206_s22), 4  ;;  %s58_s23 = scvt.s32.f32 %s208_s20 }
  0x55   :  { %s132_s24 = sadd.s32 4294967295, %s210_s22 }
  0x56   :  { %s59_s25 = ssub.f32 %s33_s14, %s58_s23  ;;  %p66_p4 = scmp.gt.s32.totalorder %s132_s24, 0 }
  0x58   :  { %p60_p5 = scmp.lt.f32.partialorder %s59_s25, -1e-06  ;;  %s212_s24 = smov (!%p66_p4, %s132_s24), 0 }
  0x59   :  { %s72_s27 = sadd.s32 4294967294, %s212_s24 }
  0x5a   :  { %s61_s26 = scalar_select %p60_p5, 1, 0 }
  0x5b   :  { %p73_p6 = scmp.gt.s32.totalorder %s72_s27, 0 }
  0x5c   :  { %s62_s28 = ssub.s32 %s208_s20, %s61_s26 }
  0x5d   :  { %p64_p7 = scmp.gt.s32.totalorder %s62_s28, 0  ;;  %s214_s27 = smov (!%p73_p6, %s72_s27), 0 }
  0x5e   :  { %s75_s29 = ssub.s32 %s212_s24, %s214_s27 }
  0x5f   :  { %s216_s28 = smov (!%p64_p7, %s62_s28), 0  ;;  %79 = sst [smem:[#allocation5 + $0x1]] %s75_s29 }
  0x60   :  { %s68_s30 = sadd.s32 4294967294, %s216_s28  ;;  %s82_s2 = sadd.s32 1, %s75_s29 }
  0x61   :  { %p69_p8 = scmp.gt.s32.totalorder %s68_s30, 0  ;;  %84 = sst [smem:[#allocation5 + $0x3]] %s82_s2 }
  0x62   :  { %s87_s3 = sadd.s32 2, %s75_s29  ;;  %94 = sst [smem:[#allocation5 + $0x7]] %s75_s29 }
  0x63   :  { %s218_s30 = smov (!%p69_p8, %s68_s30), 0  ;;  %89 = sst [smem:[#allocation5 + $0x5]] %s87_s3 }
  0x64   :  { %s71_s4 = ssub.s32 %s216_s28, %s218_s30  ;;  %98 = sst [smem:[#allocation5 + $0x9]] %s82_s2 }
  0x65   :  { %77 = sst [smem:[#allocation5]] %s71_s4  ;;  %s90_s5 = sadd.s32 1, %s71_s4 }
  0x66   :  { %81 = sst [smem:[#allocation5 + $0x2]] %s71_s4 }
  0x67   :  { %86 = sst [smem:[#allocation5 + $0x4]] %s71_s4 }
  0x68   :  { %92 = sst [smem:[#allocation5 + $0x6]] %s90_s5 }
  0x69   :  { %96 = sst [smem:[#allocation5 + $0x8]] %s90_s5 }
  0x6a   :  { %100 = sst [smem:[#allocation5 + $0xa]] %s90_s5 }
  0x6b   :  { %102 = sst [smem:[#allocation5 + $0xb]] %s87_s3 }
  0x6c   :  { %111 = dma.smem_to_hbm %s184_s9, 16, %s109_s8, [#allocation4]  }
  0x6d   :  { %179 = dma.done.wait [#allocation4], 16  }
  0x6e   :  { %180 = vsyncadd [#allocation4], 4294967280 }
  0x6f   :  { %116 = sfence }
  0x70   :  { %117 = vsyncpa [#allocation3], 1 }
  0x71   :  { %118 = vsyncpa [#allocation4], 1 }

</bundles_post_ra>
